<compile_context>
chip_gen: v7x
topology: tpu7x:2x2x1
jax: 0.10.0
libtpu: 0.0.40
codegen_flags: <defaults>
</compile_context>

<pallas_src>
import jax
import jax.numpy as jnp
from jax.experimental import pallas as pl
from jax.experimental.pallas import tpu as pltpu


# ----------------------------------------------------------------------------
# Kernel
# ----------------------------------------------------------------------------
def victim_kernel(x_ref, w1_ref, b1_ref, w2_ref, b2_ref, o_ref):
    # In-kernel bf16 cast of x (VPU work hidden under the x DMA). Avoids a
    # separate wrapper-side astype = a full extra HBM pass over x.
    x_bf16 = x_ref[...].astype(jnp.bfloat16)
    # Dominant matmul: bf16 operands, f32 accumulate on the MXU.
    h = jnp.dot(x_bf16, w1_ref[...], preferred_element_type=jnp.float32)
    # Bias + ReLU in f32 on the VPU (b1 is a (1, H) VMEM resident ->
    # hardware sublane broadcast).
    h = jnp.maximum(h + b1_ref[...], 0.0)
    # Small classifier matmul, also on the bf16 MXU path; f32 bias epilogue;
    # bf16 lane-dense (128-wide) store.
    o = jnp.dot(h.astype(jnp.bfloat16), w2_ref[...],
                preferred_element_type=jnp.float32)
    o_ref[...] = (o + b2_ref[...]).astype(o_ref.dtype)


# ----------------------------------------------------------------------------
# One-time parameter preparation (hoisted out of the per-call hot path)
# ----------------------------------------------------------------------------
def prepare_victim_params(mean_c, std_c, w1, b1, w2, b2, spatial):
    """Fold the per-channel normalization into layer 1 and pad the classifier.

        w1' = diag(1/std_feat) @ w1
        b1' = b1 - (mean/std)_feat @ w1

    Returns (w1_bf16, b1_f32, w2_pad_bf16, b2_pad_f32, ncls).
    Call once and reuse; the forward hot path is then a single pallas_call.
    """
    hid = w1.shape[1]
    ncls = w2.shape[1]
    ncls_pad = ((ncls + 127) // 128) * 128  # lane-dense output width

    inv_std_feat = jnp.repeat(1.0 / std_c.astype(jnp.float32), spatial)   # [feat]
    mean_feat = jnp.repeat(mean_c.astype(jnp.float32), spatial)           # [feat]
    w1_folded = w1.astype(jnp.float32) * inv_std_feat[:, None]            # [feat, hid]
    b1_folded = (b1.reshape(1, hid).astype(jnp.float32)
                 - (mean_feat * inv_std_feat)[None, :] @ w1.astype(jnp.float32))

    # Zero-pad classifier to a multiple of 128 output lanes; bf16 weights.
    w2_pad = jnp.zeros((hid, ncls_pad), jnp.float32).at[:, :ncls].set(
        w2.astype(jnp.float32))
    b2_pad = jnp.zeros((1, ncls_pad), jnp.float32).at[:, :ncls].set(
        b2.reshape(1, ncls).astype(jnp.float32))

    return (w1_folded.astype(jnp.bfloat16),   # bf16 MXU operand
            b1_folded,                        # f32 epilogue bias
            w2_pad.astype(jnp.bfloat16),      # bf16 MXU operand
            b2_pad,                           # f32 epilogue bias
            ncls)


def _choose_block_b(B, feat, x_vmem_budget_bytes=20 * 1024 * 1024):
    """Batch-tile size: big enough to amortize ~0.35us/step overhead, small
    enough that the double-buffered f32 x tile fits a v7x-safe VMEM budget,
    and (when the batch allows) >=2 grid steps so v7x's 2nd TC gets work."""
    tm_cap = x_vmem_budget_bytes // (2 * feat * 4)   # 2 bufs * f32
    tm_cap = max(8, (tm_cap // 8) * 8)               # sublane-align
    tm = min(tm_cap, B)
    if B > 8 and tm >= B:
        # Split roughly in two (8-aligned) so the 1-D "parallel" grid has >=2
        # steps per chip (v7x megacore sharding).
        tm = max(8, ((B + 1) // 2 // 8) * 8)
    return max(1, tm)


# ----------------------------------------------------------------------------
# Hot-path forward
# ----------------------------------------------------------------------------
def victim_forward(x_nchw, params, *, block_b=None):
    """out = model(input_transform(x)) with pre-folded params (bf16 output)."""
    w1_bf16, b1_f32, w2_bf16, b2_f32, ncls = params
    B, C, H, W = x_nchw.shape
    feat = C * H * W
    hid = w1_bf16.shape[1]
    ncls_pad = w2_bf16.shape[1]

    # Plain reshape view of x — stays f32 in HBM; bf16 cast happens in-kernel.
    x_flat = x_nchw.reshape(B, feat)

    tm = block_b if block_b is not None else _choose_block_b(B, feat)
    tm = min(tm, B)
    grid = (pl.cdiv(B, tm),)

    out = pl.pallas_call(
        victim_kernel,
        out_shape=jax.ShapeDtypeStruct((B, ncls_pad), jnp.bfloat16),
        grid=grid,
        in_specs=[
            pl.BlockSpec((tm, feat), lambda i: (i, 0)),        # x tile (f32)
            pl.BlockSpec((feat, hid), lambda i: (0, 0)),       # w1 bf16 (resident)
            pl.BlockSpec((1, hid), lambda i: (0, 0)),          # b1 f32 (resident)
            pl.BlockSpec((hid, ncls_pad), lambda i: (0, 0)),   # w2 bf16 (resident)
            pl.BlockSpec((1, ncls_pad), lambda i: (0, 0)),     # b2 f32 (resident)
        ],
        out_specs=pl.BlockSpec((tm, ncls_pad), lambda i: (i, 0)),
        compiler_params=pltpu.CompilerParams(
            dimension_semantics=("parallel",),      # v7x: shard batch over TCs
            vmem_limit_bytes=32 * 1024 * 1024,      # safe on v5e/v6e/v7x
        ),
    )(x_flat, w1_bf16, b1_f32, w2_bf16, b2_f32)

    # Slice off the lane padding; upcast lazily at the consumer if needed.
    return out[:, :ncls]


# ----------------------------------------------------------------------------
# Pure-JAX reference
# ----------------------------------------------------------------------------
def _reference(x_nchw, mean_c, std_c, w1, b1, w2, b2):
    xn = (x_nchw - mean_c[None, :, None, None]) / std_c[None, :, None, None]
    xf = xn.reshape(x_nchw.shape[0], -1)
    h = jnp.maximum(xf @ w1 + b1, 0.0)
    return h @ w2 + b2


if __name__ == "__main__":
    # Small shapes consistent with the forward pass: batch=2, channels=4, spatial=16.
    B, C, H, W = 2, 4, 16, 16
    FEAT = C * H * W            # 1024
    HID = 32
    NCLS = 10

    key = jax.random.PRNGKey(0)
    kx, k1, k2, k3, k4 = jax.random.split(key, 5)

    x = jax.random.normal(kx, (B, C, H, W), dtype=jnp.float32)

    # Deterministic "input_transform" statistics (per-channel).
    mean_c = jnp.linspace(-0.5, 0.5, C, dtype=jnp.float32)
    std_c = jnp.linspace(0.5, 1.5, C, dtype=jnp.float32)

    # Deterministic model parameters.
    w1 = jax.random.normal(k1, (FEAT, HID), dtype=jnp.float32) * 0.02
    b1 = jax.random.normal(k2, (1, HID), dtype=jnp.float32) * 0.01
    w2 = jax.random.normal(k3, (HID, NCLS), dtype=jnp.float32) * 0.1
    b2 = jax.random.normal(k4, (1, NCLS), dtype=jnp.float32) * 0.01

    # Prepare folded params once (out of the per-call hot path).
    params = prepare_victim_params(mean_c, std_c, w1, b1, w2, b2, spatial=H * W)
    params = jax.block_until_ready(params)

    out = victim_forward(x, params)
    out = jax.block_until_ready(out)

    ref = _reference(x, mean_c, std_c, w1, b1, w2, b2)
    assert out.shape == (B, NCLS)
    # bf16 MXU operands + bf16 output -> ~1e-3 level deviation from the pure
    # f32 reference at these magnitudes; tolerance set accordingly.
    assert jnp.allclose(out.astype(jnp.float32), ref, atol=5e-2, rtol=5e-2), \
        "mismatch vs reference"

    print("KERNEL_OK")
</pallas_src>

<mosaic_0001>
module attributes {stable_mosaic.version = 11 : i64} {
  func.func @victim_kernel(%arg0: i32, %arg1: memref<2x1024xf32, #tpu.memory_space<vmem>>, %arg2: memref<1024x32xbf16, #tpu.memory_space<vmem>>, %arg3: memref<1x32xf32, #tpu.memory_space<vmem>>, %arg4: memref<32x128xbf16, #tpu.memory_space<vmem>>, %arg5: memref<1x128xf32, #tpu.memory_space<vmem>>, %arg6: memref<2x128xbf16, #tpu.memory_space<vmem>>) attributes {dimension_semantics = [#tpu.dimension_semantics<parallel>], iteration_bounds = array<i64: 1>, scalar_prefetch = 0 : i64, scratch_operands = 0 : i64, tpu.core_type = #tpu.core_type<tc>, window_params = [{transform_indices = @transform_0, window_bounds = array<i64: 2, 1024>}, {pipeline_mode = #tpu.pipeline_mode<synchronous>, transform_indices = @transform_1, window_bounds = array<i64: 1024, 32>}, {pipeline_mode = #tpu.pipeline_mode<synchronous>, transform_indices = @transform_2, window_bounds = array<i64: 1, 32>}, {pipeline_mode = #tpu.pipeline_mode<synchronous>, transform_indices = @transform_3, window_bounds = array<i64: 32, 128>}, {pipeline_mode = #tpu.pipeline_mode<synchronous>, transform_indices = @transform_4, window_bounds = array<i64: 1, 128>}, {transform_indices = @transform_5, window_bounds = array<i64: 2, 128>}]} {
    %c0 = arith.constant 0 : index
    %c0_0 = arith.constant 0 : index
    %0 = vector.load %arg1[%c0, %c0_0] : memref<2x1024xf32, #tpu.memory_space<vmem>>, vector<2x1024xf32>
    %1 = arith.truncf %0 : vector<2x1024xf32> to vector<2x1024xbf16>
    %c0_1 = arith.constant 0 : index
    %c0_2 = arith.constant 0 : index
    %2 = vector.load %arg2[%c0_1, %c0_2] : memref<1024x32xbf16, #tpu.memory_space<vmem>>, vector<1024x32xbf16>
    %cst = arith.constant dense<0.000000e+00> : vector<2x32xf32>
    %3 = tpu.matmul %1, %2, %cst {dimension_numbers = #tpu.dot_dimension_numbers<[1], [0], [0], [1], [0, 0, 1, 1], [], []>} : vector<2x1024xbf16>, vector<1024x32xbf16>, vector<2x32xf32> -> vector<2x32xf32>
    %c0_3 = arith.constant 0 : index
    %c0_4 = arith.constant 0 : index
    %4 = vector.load %arg3[%c0_3, %c0_4] : memref<1x32xf32, #tpu.memory_space<vmem>>, vector<1x32xf32>
    %5 = vector.broadcast %4 : vector<1x32xf32> to vector<2x32xf32>
    %6 = arith.addf %3, %5 : vector<2x32xf32>
    %cst_5 = arith.constant 0.000000e+00 : f32
    %7 = vector.broadcast %cst_5 : f32 to vector<2x32xf32>
    %8 = arith.maximumf %6, %7 : vector<2x32xf32>
    %9 = arith.truncf %8 : vector<2x32xf32> to vector<2x32xbf16>
    %c0_6 = arith.constant 0 : index
    %c0_7 = arith.constant 0 : index
    %10 = vector.load %arg4[%c0_6, %c0_7] : memref<32x128xbf16, #tpu.memory_space<vmem>>, vector<32x128xbf16>
    %cst_8 = arith.constant dense<0.000000e+00> : vector<2x128xf32>
    %11 = tpu.matmul %9, %10, %cst_8 {dimension_numbers = #tpu.dot_dimension_numbers<[1], [0], [0], [1], [0, 0, 1, 1], [], []>} : vector<2x32xbf16>, vector<32x128xbf16>, vector<2x128xf32> -> vector<2x128xf32>
    %c0_9 = arith.constant 0 : index
    %c0_10 = arith.constant 0 : index
    %12 = vector.load %arg5[%c0_9, %c0_10] : memref<1x128xf32, #tpu.memory_space<vmem>>, vector<1x128xf32>
    %13 = vector.broadcast %12 : vector<1x128xf32> to vector<2x128xf32>
    %14 = arith.addf %11, %13 : vector<2x128xf32>
    %15 = arith.truncf %14 : vector<2x128xf32> to vector<2x128xbf16>
    %c0_11 = arith.constant 0 : index
    %c0_12 = arith.constant 0 : index
    %16 = vector.load %arg6[%c0_11, %c0_12] : memref<2x128xbf16, #tpu.memory_space<vmem>>, vector<2x128xbf16>
    tpu.vector_store %arg6[%c0_11, %c0_12], %15 {strides = array<i32>} : memref<2x128xbf16, #tpu.memory_space<vmem>>, vector<2x128xbf16>,
    return
  }
  func.func @transform_0(%arg0: i32) -> (i32, i32) {
    %c0_i32 = arith.constant 0 : i32
    %c0_i32_0 = arith.constant 0 : i32
    return %arg0, %c0_i32 : i32, i32
  }
  func.func @transform_1(%arg0: i32) -> (i32, i32) {
    %c0_i32 = arith.constant 0 : i32
    %c0_i32_0 = arith.constant 0 : i32
    %c0_i32_1 = arith.constant 0 : i32
    return %c0_i32, %c0_i32_0 : i32, i32
  }
  func.func @transform_2(%arg0: i32) -> (i32, i32) {
    %c0_i32 = arith.constant 0 : i32
    %c0_i32_0 = arith.constant 0 : i32
    %c0_i32_1 = arith.constant 0 : i32
    return %c0_i32, %c0_i32_0 : i32, i32
  }
  func.func @transform_3(%arg0: i32) -> (i32, i32) {
    %c0_i32 = arith.constant 0 : i32
    %c0_i32_0 = arith.constant 0 : i32
    %c0_i32_1 = arith.constant 0 : i32
    return %c0_i32, %c0_i32_0 : i32, i32
  }
  func.func @transform_4(%arg0: i32) -> (i32, i32) {
    %c0_i32 = arith.constant 0 : i32
    %c0_i32_0 = arith.constant 0 : i32
    %c0_i32_1 = arith.constant 0 : i32
    return %c0_i32, %c0_i32_0 : i32, i32
  }
  func.func @transform_5(%arg0: i32) -> (i32, i32) {
    %c0_i32 = arith.constant 0 : i32
    %c0_i32_0 = arith.constant 0 : i32
    return %arg0, %c0_i32 : i32, i32
  }
}

</mosaic_0001>

<bundles_post_ra>
// kernel: tpu_custom_call.1
= control target key start
LH: loop header
LB: loop body
LE: loop exit
PB: predicated region body
PF: predicated region fallthrough
CT: control target
= control target key end

     0   :  { %v30_v28 = vlaneseq  ;;  %v1104_v36 = vmov 1983009808   ;;  %s1366_s0 = inlined_call_operand.vmem [shape: f32[2,1024], index: 0, kind: input, shape index: {}]   ;;  %s1367_s1 = inlined_call_operand.vmem [shape: bf16[1024,32], index: 1, kind: input, shape index: {}]   ;;  %s1368_s2 = inlined_call_operand.vmem [shape: f32[1,32], index: 2, kind: input, shape index: {}]   ;;  %s1369_s3 = inlined_call_operand.vmem [shape: bf16[32,128], index: 3, kind: input, shape index: {}]   ;;  %s1370_s4 = inlined_call_operand.vmem [shape: f32[1,128], index: 4, kind: input, shape index: {}]   ;;  %s1371_s5 = inlined_call_operand.hbm [shape: bf16[2,128], index: 5, kind: output, shape index: {}]  }
   0x1   :  { %v1012_v0 = vld [vmem:[%s1367_s1 + $0x40] sm:$0xff]   ;;  %v1016_v4 = vld [vmem:[%s1367_s1 + $0x48] sm:$0xff]   ;;  %v1020_v8 = vld [vmem:[%s1367_s1 + $0x50] sm:$0xff]   ;;  %v28_v37 = vunpack.c.l.s4 %v1104_v36 }
   0x2   :  { %v1013_v1 = vld [vmem:[%s1367_s1 + $0xc0] sm:$0xff]   ;;  %909 = vmatprep.subr.bf16.mxu0 %v1012_v0  ;;  %v1017_v5 = vld [vmem:[%s1367_s1 + $0xc8] sm:$0xff]   ;;  %v1021_v9 = vld [vmem:[%s1367_s1 + $0xd0] sm:$0xff]   ;;  %v31_v33 = vshrl.u32 %v30_v28, 7 }
   0x3   :  { %v1014_v2 = vld [vmem:[%s1367_s1] sm:$0xff]   ;;  %931 = vmatprep.subr.bf16.mxu1 %v1013_v1  ;;  %v1018_v6 = vld [vmem:[%s1367_s1 + $0x8] sm:$0xff]   ;;  %v1022_v10 = vld [vmem:[%s1367_s1 + $0x10] sm:$0xff]   ;;  %v29_v39 = vunpack.c.0.s8 %v28_v37 }
   0x4   :  { %v1015_v3 = vld [vmem:[%s1367_s1 + $0x80] sm:$0xff]   ;;  %910 = vmatpush3.bf16.msra.mxu0 %v1014_v2  ;;  %v1019_v7 = vld [vmem:[%s1367_s1 + $0x88] sm:$0xff]   ;;  %v1023_v11 = vld [vmem:[%s1367_s1 + $0x90] sm:$0xff]  }
   0x5   :  { %932 = vmatpush3.bf16.msra.mxu1 %v1015_v3  ;;  %911 = vmatprep.subr.bf16.mxu0 %v1016_v4  ;;  %v1024_v12 = vld [vmem:[%s1367_s1 + $0x58] sm:$0xff]   ;;  %v1028_v16 = vld [vmem:[%s1367_s1 + $0x60] sm:$0xff]   ;;  %v1032_v20 = vld [vmem:[%s1367_s1 + $0x68] sm:$0xff]   ;;  %v1243_v41 = vsub.s32 %v29_v39, %v31_v33 }
   0x6   :  { %933 = vmatprep.subr.bf16.mxu1 %v1017_v5  ;;  %v1025_v13 = vld [vmem:[%s1367_s1 + $0xd8] sm:$0xff]   ;;  %v1029_v17 = vld [vmem:[%s1367_s1 + $0xe0] sm:$0xff]   ;;  %v1033_v21 = vld [vmem:[%s1367_s1 + $0xe8] sm:$0xff]  }
   0x7   :  { %v1026_v14 = vld [vmem:[%s1367_s1 + $0x18] sm:$0xff]   ;;  %v1030_v18 = vld [vmem:[%s1367_s1 + $0x20] sm:$0xff]   ;;  %v1034_v22 = vld [vmem:[%s1367_s1 + $0x28] sm:$0xff]  }
   0x8   :  { %912 = vmatpush3.bf16.msra.mxu0 %v1018_v6  ;;  %v1027_v15 = vld [vmem:[%s1367_s1 + $0x98] sm:$0xff]   ;;  %v1031_v19 = vld [vmem:[%s1367_s1 + $0xa0] sm:$0xff]   ;;  %v1035_v23 = vld [vmem:[%s1367_s1 + $0xa8] sm:$0xff]  }
   0x9   :  { %934 = vmatpush3.bf16.msra.mxu1 %v1019_v7  ;;  %913 = vmatprep.subr.bf16.mxu0 %v1020_v8  ;;  %v1036_v24 = vld [vmem:[%s1367_s1 + $0x70] sm:$0xff]   ;;  %v1040_v29 = vld [vmem:[%s1367_s1 + $0x78] sm:$0xff]   ;;  %v22_v34 = vld [vmem:[%s1366_s0] sm:$0xff] }
   0xa   :  { %935 = vmatprep.subr.bf16.mxu1 %v1021_v9  ;;  %v1037_v25 = vld [vmem:[%s1367_s1 + $0xf0] sm:$0xff]   ;;  %v1041_v30 = vld [vmem:[%s1367_s1 + $0xf8] sm:$0xff]   ;;  %v1045_v35 = vld [vmem:[%s1367_s1 + $0x140] sm:$0xff]   ;;  %v26_v40 = vcombine.high %v22_v34, %v22_v34  ;;  %v33_v42 = vrot.slane %v22_v34, %v1243_v41 }
   0xb   :  { %v1038_v26 = vld [vmem:[%s1367_s1 + $0x30] sm:$0xff]   ;;  %v1042_v31 = vld [vmem:[%s1367_s1 + $0x38] sm:$0xff]   ;;  %v1046_v38 = vld [vmem:[%s1367_s1 + $0x1c0] sm:$0xff]  }
   0xc   :  { %914 = vmatpush3.bf16.msra.mxu0 %v1022_v10  ;;  %v1039_v27 = vld [vmem:[%s1367_s1 + $0xb0] sm:$0xff]   ;;  %v1043_v32 = vld [vmem:[%s1367_s1 + $0xb8] sm:$0xff]   ;;  %v40_v43 = vrot.slane %v26_v40, %v1243_v41  ;;  %v41_v44 = vcombine.high %v33_v42, %v33_v42  ;;  %v1047_v46 = vld [vmem:[%s1367_s1 + $0x100] sm:$0xff]   ;;  %v68_v47 = vpack.c.bf16 %v33_v42, %v33_v42 }
   0xd   :  { %936 = vmatpush3.bf16.msra.mxu1 %v1023_v11  ;;  %915 = vmatprep.subr.bf16.mxu0 %v1024_v12  ;;  %v1048_v49 = vld [vmem:[%s1367_s1 + $0x180] sm:$0xff]   ;;  %v1049_v52 = vld [vmem:[%s1367_s1 + $0x148] sm:$0xff]   ;;  %v1053_v56 = vld [vmem:[%s1367_s1 + $0x150] sm:$0xff]  }
   0xe   :  { %937 = vmatprep.subr.bf16.mxu1 %v1025_v13  ;;  %v42_v45 = vcombine.high %v40_v43, %v40_v43  ;;  %v70_v48 = vpack.c.bf16 %v40_v43, %v40_v43  ;;  %v69_v50 = vpack.c.bf16 %v41_v44, %v41_v44  ;;  %v1050_v53 = vld [vmem:[%s1367_s1 + $0x1c8] sm:$0xff]   ;;  %v1054_v57 = vld [vmem:[%s1367_s1 + $0x1d0] sm:$0xff]   ;;  %v1057_v60 = vld [vmem:[%s1367_s1 + $0x158] sm:$0xff]  }
   0xf   :  { %v1051_v54 = vld [vmem:[%s1367_s1 + $0x108] sm:$0xff]   ;;  %v1055_v58 = vld [vmem:[%s1367_s1 + $0x110] sm:$0xff]   ;;  %v1058_v61 = vld [vmem:[%s1367_s1 + $0x1d8] sm:$0xff]  }
  0x10   :  { %916 = vmatpush3.bf16.msra.mxu0 %v1026_v14  ;;  %v71_v51 = vpack.c.bf16 %v42_v45, %v42_v45  ;;  %627 = vmatprep.mubr.bf16.mxu0 %v69_v50  ;;  %v1052_v55 = vld [vmem:[%s1367_s1 + $0x188] sm:$0xff]   ;;  %v1056_v59 = vld [vmem:[%s1367_s1 + $0x190] sm:$0xff]   ;;  %v1059_v62 = vld [vmem:[%s1367_s1 + $0x118] sm:$0xff]  }
  0x11   :  { %938 = vmatpush3.bf16.msra.mxu1 %v1027_v15  ;;  %917 = vmatprep.subr.bf16.mxu0 %v1028_v16  ;;  %v1060_v63 = vld [vmem:[%s1367_s1 + $0x198] sm:$0xff]   ;;  %v1061_v0 = vld [vmem:[%s1367_s1 + $0x160] sm:$0xff]   ;;  %v1065_v4 = vld [vmem:[%s1367_s1 + $0x168] sm:$0xff]  }
  0x12   :  { %939 = vmatprep.subr.bf16.mxu1 %v1029_v17  ;;  %667 = vmatprep.mubr.bf16.mxu1 %v71_v51  ;;  %v1062_v1 = vld [vmem:[%s1367_s1 + $0x1e0] sm:$0xff]   ;;  %v1066_v5 = vld [vmem:[%s1367_s1 + $0x1e8] sm:$0xff]   ;;  %v1069_v8 = vld [vmem:[%s1367_s1 + $0x170] sm:$0xff]  }
  0x13   :  { %v1063_v2 = vld [vmem:[%s1367_s1 + $0x120] sm:$0xff]   ;;  %v1067_v6 = vld [vmem:[%s1367_s1 + $0x128] sm:$0xff]   ;;  %v1070_v9 = vld [vmem:[%s1367_s1 + $0x1f0] sm:$0xff]  }
  0x14   :  { %918 = vmatpush3.bf16.msra.mxu0 %v1030_v18  ;;  %v1064_v3 = vld [vmem:[%s1367_s1 + $0x1a0] sm:$0xff]   ;;  %v1068_v7 = vld [vmem:[%s1367_s1 + $0x1a8] sm:$0xff]  }
  0x15   :  { %940 = vmatpush3.bf16.msra.mxu1 %v1031_v19  ;;  %919 = vmatprep.subr.bf16.mxu0 %v1032_v20  ;;  %v23_v10 = vld [vmem:[%s1366_s0 + $0x8] sm:$0xff] }
  0x16   :  { %941 = vmatprep.subr.bf16.mxu1 %v1033_v21  ;;  %v50_v11 = vrot.slane %v23_v10, %v1243_v41  ;;  %v43_v12 = vcombine.high %v23_v10, %v23_v10 }
  0x18   :  { %920 = vmatpush3.bf16.msra.mxu0 %v1034_v22 }
  0x19   :  { %942 = vmatpush3.bf16.msra.mxu1 %v1035_v23  ;;  %921 = vmatprep.subr.bf16.mxu0 %v1036_v24 }
  0x1a   :  { %943 = vmatprep.subr.bf16.mxu1 %v1037_v25 }
  0x1c   :  { %922 = vmatpush3.bf16.msra.mxu0 %v1038_v26 }
  0x1d   :  { %944 = vmatpush3.bf16.msra.mxu1 %v1039_v27  ;;  %923 = vmatprep.subr.bf16.mxu0 %v1040_v29 }
  0x1e   :  { %945 = vmatprep.subr.bf16.mxu1 %v1041_v30 }
  0x20   :  { %924 = vmatpush3.bf16.msra.mxu0 %v1042_v31 }
  0x21   :  { %946 = vmatpush3.bf16.msra.mxu1 %v1043_v32  ;;  %953 = vmatprep.subr.bf16.mxu0 %v1045_v35 }
  0x22   :  { %975 = vmatprep.subr.bf16.mxu1 %v1046_v38 }
  0x23   :  { %628 = vmatmul.mubr.bf16.vlgmr.msra.gmra.mrb[0].mxu0 %v68_v47 }
  0x24   :  { %668 = vmatmul.mubr.bf16.vlgmr.msra.gmra.mrb[0].mxu1 %v70_v48  ;;  %954 = vmatpush3.bf16.msra.mxu0 %v1047_v46 }
  0x25   :  { %976 = vmatpush3.bf16.msra.mxu1 %v1048_v49  ;;  %955 = vmatprep.subr.bf16.mxu0 %v1049_v52 }
  0x26   :  { %977 = vmatprep.subr.bf16.mxu1 %v1050_v53 }
  0x28   :  { %956 = vmatpush3.bf16.msra.mxu0 %v1051_v54 }
  0x29   :  { %978 = vmatpush3.bf16.msra.mxu1 %v1052_v55  ;;  %957 = vmatprep.subr.bf16.mxu0 %v1053_v56 }
  0x2a   :  { %979 = vmatprep.subr.bf16.mxu1 %v1054_v57 }
  0x2c   :  { %958 = vmatpush3.bf16.msra.mxu0 %v1055_v58 }
  0x2d   :  { %980 = vmatpush3.bf16.msra.mxu1 %v1056_v59  ;;  %959 = vmatprep.subr.bf16.mxu0 %v1057_v60 }
  0x2e   :  { %981 = vmatprep.subr.bf16.mxu1 %v1058_v61 }
  0x30   :  { %960 = vmatpush3.bf16.msra.mxu0 %v1059_v62 }
  0x31   :  { %982 = vmatpush3.bf16.msra.mxu1 %v1060_v63  ;;  %961 = vmatprep.subr.bf16.mxu0 %v1061_v0 }
  0x32   :  { %983 = vmatprep.subr.bf16.mxu1 %v1062_v1 }
  0x34   :  { %962 = vmatpush3.bf16.msra.mxu0 %v1063_v2 }
  0x35   :  { %984 = vmatpush3.bf16.msra.mxu1 %v1064_v3  ;;  %963 = vmatprep.subr.bf16.mxu0 %v1065_v4 }
  0x36   :  { %985 = vmatprep.subr.bf16.mxu1 %v1066_v5 }
  0x37   :  { %10 = vsyncpa [#allocation3], 0  ;;  %v1071_v13 = vld [vmem:[%s1367_s1 + $0x130] sm:$0xff]   ;;  %v58_v15 = vcombine.high %v50_v11, %v50_v11  ;;  %v57_v16 = vrot.slane %v43_v12, %v1243_v41  ;;  %v1073_v17 = vld [vmem:[%s1367_s1 + $0x178] sm:$0xff]   ;;  %v72_v24 = vpack.c.bf16 %v50_v11, %v50_v11  ;;  %v1105_v27 = vmov 0.0   ;;  %s1107_s29 = smov [#allocation2]  }
  0x38   :  { %964 = vmatpush3.bf16.msra.mxu0 %v1067_v6  ;;  %v1072_v14 = vld [vmem:[%s1367_s1 + $0x1b0] sm:$0xff]   ;;  %v1074_v18 = vld [vmem:[%s1367_s1 + $0x1f8] sm:$0xff]   ;;  %v1078_v26 = vld [vmem:[%s1369_s3] sm:$0xff]   ;;  %vm1106_vm0 = vmmov 0   ;;  %vm780_vm1 = vcmask 261120   ;;  %s832_s30 = sshll.u32 %s1107_s29, 4  ;;  %s833_s30 = int_to_ptr.vmem [resolvable:$true] %s832_s30 }
  0x39   :  { %986 = vmatpush3.bf16.msra.mxu1 %v1068_v7  ;;  %965 = vmatprep.subr.bf16.mxu0 %v1069_v8  ;;  %v73_v19 = vpack.c.bf16 %v58_v15, %v58_v15  ;;  %v59_v20 = vcombine.high %v57_v16, %v57_v16  ;;  %v1075_v21 = vld [vmem:[%s1367_s1 + $0x138] sm:$0xff]   ;;  %v74_v25 = vpack.c.bf16 %v57_v16, %v57_v16  ;;  %v1079_v28 = vld [vmem:[%s1369_s3 + $0x8] sm:$0xff]   ;;  %v840_v31 = vld [vmem:[%s1368_s2] ss:$0 sm:$0xff]  ;;  %s1080_s6 = scalar_lea.vmem %s833_s30, 16  ;;  %s1084_s7 = scalar_lea.vmem %s833_s30, 32 }
  0x3a   :  { %987 = vmatprep.subr.bf16.mxu1 %v1070_v9  ;;  %v1076_v22 = vld [vmem:[%s1367_s1 + $0x1b8] sm:$0xff]   ;;  %v905_v56 = vld [vmem:[%s1370_s4] ss:$0 sm:$0xff]  ;;  %p1081_p0 = scmp.ne.s32.totalorder %s833_s30, %s1080_s6  ;;  %p1085_p1 = scmp.lt.s32.totalorder %s833_s30, %s833_s30 }
  0x3b   :  { %v75_v23 = vpack.c.bf16 %v59_v20, %v59_v20  ;;  %707 = vmatprep.mubr.bf16.mxu0 %v73_v19  ;;  %p1086_p2 = scmp.lt.s32.totalorder %s1084_s7, %s1080_s6 }
  0x3c   :  { %966 = vmatpush3.bf16.msra.mxu0 %v1071_v13 }
  0x3d   :  { %988 = vmatpush3.bf16.msra.mxu1 %v1072_v14  ;;  %967 = vmatprep.subr.bf16.mxu0 %v1073_v17  ;;  %p1087_p3 = por %p1086_p2, %p1085_p1 }
  0x3e   :  { %989 = vmatprep.subr.bf16.mxu1 %v1074_v18  ;;  %747 = vmatprep.mubr.bf16.mxu1 %v75_v23 }
  0x3f   :  { %p1088_p4 = pnand %p1087_p3, %p1081_p0 }
  0x40   :  { %968 = vmatpush3.bf16.msra.mxu0 %v1075_v21 }
  0x41   :  { %990 = vmatpush3.bf16.msra.mxu1 %v1076_v22  ;;  %1000 = vmatprep.subr.bf16.mxu0 %v1105_v27 }
  0x43   :  { %708 = vmatmul.mubr.bf16.vlgmr.msra.gmra.mrb[4].mxu0 %v72_v24 }
  0x44   :  { %748 = vmatmul.mubr.bf16.vlgmr.msra.gmra.mrb[4].mxu1 %v74_v25  ;;  %1001 = vmatpush3.bf16.msra.mxu0 %v1078_v26 }
  0x45   :  { %1002 = vmatprep.subr.bf16.mxu0 %v1105_v27  ;;  %1004 = vmatprep.mubr.msk.bf16.mxu0 %vm1106_vm0, %v1105_v27 }
  0x48   :  { %1003 = vmatpush3.bf16.msra.mxu0 %v1079_v28 }
  0xf6   :  { %v925_v29 = vpop.f32.mrb[0].mxu0 }
  0xf7   :  { %v947_v30 = vpop.f32.mrb[0].mxu1  ;;  %v926_v32 = vpop.f32.mrb[1].mxu0 }
  0xf8   :  { %v948_v33 = vpop.f32.mrb[1].mxu1  ;;  %v927_v34 = vadd.f32 %v926_v32, %v925_v29  ;;  %v928_v36 = vpop.f32.mrb[2].mxu0 }
  0xf9   :  { %v949_v35 = vadd.f32 %v948_v33, %v947_v30  ;;  %v950_v37 = vpop.f32.mrb[2].mxu1  ;;  %v929_v38 = vpop.f32.mrb[3].mxu0 }
  0xfa   :  { %v951_v39 = vpop.f32.mrb[3].mxu1  ;;  %v630_v40 = vadd.f32 %v927_v34, %v840_v31 }
  0xfc   :  { %v670_v41 = vadd.f32 %v949_v35, %v630_v40 }
 0x116   :  { %v969_v42 = vpop.f32.mrb[4].mxu0 }
 0x117   :  { %v991_v43 = vpop.f32.mrb[4].mxu1  ;;  %v970_v44 = vpop.f32.mrb[5].mxu0 }
 0x118   :  { %v992_v45 = vpop.f32.mrb[5].mxu1  ;;  %v971_v46 = vadd.f32 %v970_v44, %v969_v42  ;;  %v972_v48 = vpop.f32.mrb[6].mxu0 }
 0x119   :  { %v993_v47 = vadd.f32 %v992_v45, %v991_v43  ;;  %v994_v49 = vpop.f32.mrb[6].mxu1  ;;  %v973_v50 = vpop.f32.mrb[7].mxu0 }
 0x11a   :  { %v995_v51 = vpop.f32.mrb[7].mxu1  ;;  %v710_v52 = vadd.f32 %v971_v46, %v670_v41 }
 0x11c   :  { %v750_v53 = vadd.f32 %v993_v47, %v710_v52 }
 0x11e   :  { %v755_v54 = vmax.f32 %v750_v53, 0.0 }
 0x120   :  { %v756_v55 = vpack.c.bf16 %v755_v54, %v755_v54 }
 0x122   :  { %1005 = vmatmul.mubr.msk.bf16.vlgmr.msra.gmra.mrb[8].mxu0 %vm780_vm1, %v756_v55 }
 0x1f5   :  { %v818_v57 = vpop.f32.mrb[8].mxu0 }
 0x1f6   :  { %v819_v58 = vadd.f32 %v905_v56, %v818_v57  ;;  %v1006_v59 = vpop.f32.mrb[9].mxu0 }
 0x1f7   :  { %v821_v60 = vpop.f32.mrb[10].mxu0 }
 0x1f8   :  { %v824_v61 = vpack.c.bf16 %v819_v58, %v819_v58  ;;  %v1007_v62 = vpop.f32.mrb[11].mxu0 }
 0x1fa   :  { %825 = vst [vmem:[#allocation2] sm:$0x1] %v824_v61 }
 0x1fb   :  { %1091 = shalt.err (!%p1088_p4)
}
 0x1fc   :  { %s1092_s9 = scalar_lea.hbm %s1371_s5, 16 }
 0x1fd   :  { %p1093_p5 = scmp.ne.s32.totalorder %s1371_s5, %s1092_s9  ;;  %p1096_p6 = scmp.lt.u32.totalorder %s1092_s9, %s1371_s5 }
 0x1ff   :  { %p1098_p7 = pnand %p1096_p6, %p1093_p5 }
 0x201   :  { %1101 = shalt.err (!%p1098_p7)
}
 0x202   :  { %835 = dma.vmem_to_hbm [thread:$0]  %s833_s30, 16, %s1371_s5, [#allocation3]  }
 0x203   :  { %1102 = dma.done.wait [#allocation3], 16  }
 0x204   :  { %1103 = vsyncadd [#allocation3], 4294967280 }
 0x205   :  { %839 = vsyncpa [#allocation3], 1 }

</bundles_post_ra>
